<compile_context>
chip_gen: v6e
topology: v6e:2x2x1
jax: 0.10.0
libtpu: 0.0.40
codegen_flags: <defaults>
</compile_context>

<pallas_src>
from typing import Callable
import functools

import jax
import jax.numpy as jnp
from jax.experimental import pallas as pl
from jax.experimental.pallas import tpu as pltpu


# ------------------- chip-trait detection (trace-time, cached) -------------

@functools.lru_cache(maxsize=1)
def _chip_traits():
    """Returns (vmem_capacity_bytes, has_bf16_eup, multi_tensorcore)."""
    vmem = None
    try:
        vmem = int(pltpu.get_tpu_info().vmem_capacity_bytes)
    except Exception:
        vmem = None
    kind = ""
    try:
        kind = jax.devices()[0].device_kind.lower()
    except Exception:
        pass
    is_v5 = "v5" in kind
    is_v7 = "v7" in kind
    if vmem is None:
        vmem = (64 << 20) if is_v7 else (128 << 20)
    has_bf16_eup = not is_v5                       # v6e/v7x have a bf16 EUP path
    multi_tc = is_v7 or vmem <= (64 << 20)         # v7x: 2 TensorCores per chip
    return vmem, has_bf16_eup, multi_tc


# ----------------------------- Pallas kernels -------------------------------

def _tanh_kernel_native(x_ref, o_ref):
    # Elementwise tanh on the whole VMEM tile, in the input dtype (f32, or
    # bf16 on chips with a bf16 EUP).
    o_ref[...] = jnp.tanh(x_ref[...])


def _tanh_kernel_f32(x_ref, o_ref):
    # Accumulate-in-f32 path for sub-32-bit dtypes on chips without bf16 EUP.
    o_ref[...] = jnp.tanh(x_ref[...].astype(jnp.float32)).astype(o_ref.dtype)


def _tanh_2d(x2d: jax.Array) -> jax.Array:
    """Tiled elementwise tanh over a lane-dense (rows, lanes) slab."""
    rows, lanes = x2d.shape
    itemsize = jnp.dtype(x2d.dtype).itemsize
    vmem_bytes, has_bf16_eup, multi_tc = _chip_traits()

    # Generation-aware tile sizing.  in+out double-buffered => 4x block bytes
    # of VMEM, which stays well inside both budgets below.
    big_vmem = vmem_bytes >= (100 << 20)                    # v5e / v6e: 128 MiB
    target_block_bytes = (4 << 20) if big_vmem else (1 << 20)   # v7x: 64 MiB/TC
    vmem_limit_bytes = (48 << 20) if big_vmem else (32 << 20)

    # Rows per block: multiple of 32 so the tile is legal for f32 (8),
    # bf16 (16) and int8/fp8 (32) sublane packing.
    max_block_rows = max(32, (target_block_bytes // (lanes * itemsize)) // 32 * 32)
    if multi_tc and rows > 32:
        # Guarantee >= 2 grid steps so ("parallel",) can split the work across
        # both v7x TensorCores even when the input would fit in one block.
        half_rows = ((pl.cdiv(rows, 2) + 31) // 32) * 32
        max_block_rows = min(max_block_rows, half_rows)
    block_rows = rows if rows <= max_block_rows else max_block_rows
    grid = (pl.cdiv(rows, block_rows),)

    use_native = (x2d.dtype == jnp.float32) or (
        x2d.dtype == jnp.bfloat16 and has_bf16_eup
    )
    kernel = _tanh_kernel_native if use_native else _tanh_kernel_f32

    return pl.pallas_call(
        kernel,
        out_shape=jax.ShapeDtypeStruct((rows, lanes), x2d.dtype),
        grid=grid,
        in_specs=[pl.BlockSpec((block_rows, lanes), lambda i: (i, 0))],
        out_specs=pl.BlockSpec((block_rows, lanes), lambda i: (i, 0)),
        compiler_params=pltpu.CompilerParams(
            dimension_semantics=("parallel",),
            vmem_limit_bytes=vmem_limit_bytes,
        ),
    )(x2d)


@jax.jit
def pallas_tanh(x: jax.Array) -> jax.Array:
    """Elementwise tanh implemented as a Pallas TPU kernel (any shape/dtype)."""
    orig_shape = x.shape
    n = x.size
    if n == 0:
        return x

    # Pick the widest lane dimension (multiple of 128, up to 1024) that
    # divides the element count -> no padding, unmasked wide vector stores.
    lanes = None
    for cand in (1024, 512, 256, 128):
        if n % cand == 0:
            lanes = cand
            break

    if lanes is not None:
        out2d = _tanh_2d(jnp.ravel(x).reshape(n // lanes, lanes))
        return out2d.reshape(orig_shape)

    # Ragged size: run the wide kernel on the 128-divisible prefix and finish
    # the (<128-element) tail on the VPU via plain jnp.tanh.  No full-size
    # pad/slice HBM round trips.
    # TODO(synk): fold the tail into the last tile via a masked pltpu.store
    # driven by an SMEM scalar n to get exactly 1R+1W HBM traffic end-to-end.
    lanes = 128
    flat = jnp.ravel(x)
    n_main = (n // lanes) * lanes
    if n_main == 0:
        return jnp.tanh(x)  # tiny input: not worth a kernel launch
    main = _tanh_2d(flat[:n_main].reshape(n_main // lanes, lanes)).reshape(-1)
    tail = jnp.tanh(flat[n_main:])
    return jnp.concatenate([main, tail]).reshape(orig_shape)


# ------------------------- Module re-implementation ------------------------

class CallableToModuleWrapper:
    """JAX/Pallas equivalent of neurotorch's CallableToModuleWrapper.

    forward(*args, **kwargs) delegates verbatim to the wrapped callable.
    """

    def __init__(self, callable_object: Callable):
        assert callable(callable_object), "The callable object must be callable."
        self.callable_object = callable_object

    def __repr__(self):
        return f"CallableToModuleWrapper({self.callable_object})"

    def forward(self, *args, **kwargs):
        return self.callable_object(*args, **kwargs)

    __call__ = forward


# --------------------------------- main ------------------------------------

if __name__ == "__main__":
    key = jax.random.PRNGKey(0)
    # NCHW input, small shapes (batch=2, channels=4, spatial=16x16).
    x = jax.random.normal(key, (2, 4, 16, 16), dtype=jnp.float32)

    module = CallableToModuleWrapper(pallas_tanh)
    out = module(x)
    out = jax.block_until_ready(out)

    # Sanity check against the reference elementwise op.
    ref = jnp.tanh(x)
    assert out.shape == x.shape and out.dtype == x.dtype
    assert jnp.allclose(out, ref, atol=1e-5, rtol=1e-5)

    print("KERNEL_OK")
</pallas_src>

<mosaic_0001>
module attributes {stable_mosaic.version = 11 : i64} {
  func.func @_tanh_kernel_native(%arg0: i32, %arg1: memref<2x1024xf32, #tpu.memory_space<vmem>>, %arg2: memref<2x1024xf32, #tpu.memory_space<vmem>>) attributes {dimension_semantics = [#tpu.dimension_semantics<parallel>], iteration_bounds = array<i64: 1>, scalar_prefetch = 0 : i64, scratch_operands = 0 : i64, tpu.core_type = #tpu.core_type<tc>, window_params = [{transform_indices = @transform_0, window_bounds = array<i64: 2, 1024>}, {transform_indices = @transform_1, window_bounds = array<i64: 2, 1024>}]} {
    %c0 = arith.constant 0 : index
    %c0_0 = arith.constant 0 : index
    %0 = vector.load %arg1[%c0, %c0_0] : memref<2x1024xf32, #tpu.memory_space<vmem>>, vector<2x1024xf32>
    %1 = math.tanh %0 : vector<2x1024xf32>
    %c0_1 = arith.constant 0 : index
    %c0_2 = arith.constant 0 : index
    %2 = vector.load %arg2[%c0_1, %c0_2] : memref<2x1024xf32, #tpu.memory_space<vmem>>, vector<2x1024xf32>
    tpu.vector_store %arg2[%c0_1, %c0_2], %1 {strides = array<i32>} : memref<2x1024xf32, #tpu.memory_space<vmem>>, vector<2x1024xf32>,
    return
  }
  func.func @transform_0(%arg0: i32) -> (i32, i32) {
    %c0_i32 = arith.constant 0 : i32
    %c0_i32_0 = arith.constant 0 : i32
    return %arg0, %c0_i32 : i32, i32
  }
  func.func @transform_1(%arg0: i32) -> (i32, i32) {
    %c0_i32 = arith.constant 0 : i32
    %c0_i32_0 = arith.constant 0 : i32
    return %arg0, %c0_i32 : i32, i32
  }
}

</mosaic_0001>

<bundles_post_ra>
// kernel: pallas_tanh.1
= control target key start
LH: loop header
LB: loop body
LE: loop exit
PB: predicated region body
PF: predicated region fallthrough
CT: control target
= control target key end

     0   :  { %s44_s0 = inlined_call_operand.vmem [shape: f32[2,1024], index: 0, kind: input, shape index: {}]   ;;  %s45_s1 = inlined_call_operand.vmem [shape: f32[2,1024], index: 1, kind: output, shape index: {}]  }
   0x1   :  { %v8_v0 = vld [vmem:[%s44_s0] sm:$0xff]  ;;  %v9_v1 = vld [vmem:[%s44_s0 + $0x8] sm:$0xff] }
   0x2   :  { %18 = vtanh.f32 %v8_v0 }
   0x3   :  { %20 = vtanh.f32 %v9_v1 }
   0xf   :  { %v19_v2 = vpop.eup %18 }
  0x10   :  { %v21_v3 = vpop.eup %20  ;;  %12 = vst [vmem:[%s45_s1] sm:$0xff] %v19_v2 }
  0x11   :  { %13 = vst [vmem:[%s45_s1 + $0x8] sm:$0xff] %v21_v3 }

</bundles_post_ra>
